<compile_context>
chip_gen: v7x
topology: tpu7x:2x2x1
jax: 0.10.0
libtpu: 0.0.40
codegen_flags: <defaults>
</compile_context>

<pallas_src>
from functools import partial

import jax
import jax.numpy as jnp
from jax.experimental import pallas as pl
from jax.experimental.pallas import tpu as pltpu

_SUB = 8        # sublane quantum; classes are padded 6 -> 8
_LANES = 128    # lane quantum; batch tiles are multiples of 128
_NEG_BIG = -1e30  # f32 sentinel for padded class rows (exp underflows to 0)


def _linear_softmax_kernel(x_ref, w_ref, b_ref, o_ref):
    # x_ref: (tb, n_in)    natural row-major batch tile (batch on sublanes)
    # w_ref: (c_pad, n_in) resident across the whole grid
    # b_ref: (c_pad, 1)    padded class rows hold -1e30
    # o_ref: (c_pad, tb)   lane-dense output (classes on sublanes, batch lanes)
    xT = x_ref[...].T                    # (n_in, tb); XLU transpose, slot idle otherwise
    w = w_ref[...]
    n_in = xT.shape[0]

    # Tiny contraction as broadcast FMAs on the VPU (static python loop).
    acc = w[:, 0:1] * xT[0:1, :]
    for k in range(1, n_in):
        acc = acc + w[:, k:k + 1] * xT[k:k + 1, :]
    logits = acc + b_ref[...]            # padded classes -> ~-1e30

    # Numerically-stable softmax over the class (sublane) axis.
    m = jnp.max(logits, axis=0, keepdims=True)
    e = jnp.exp(logits - m)              # padded class rows underflow to 0
    denom = jnp.sum(e, axis=0, keepdims=True)
    o_ref[...] = e / denom               # exact divide (correctness fix)


@partial(jax.jit, static_argnames=("max_tile_lanes", "transpose_output",
                                   "vmem_limit_bytes"))
def _linear_classifier_pallas(x, weight, bias, *, max_tile_lanes=8192,
                              transpose_output=True, vmem_limit_bytes=None):
    """Pallas path. x: (B, n_in) f32; weight: (n_out, n_in); bias: (n_out,)."""
    B, n_in = x.shape
    n_out = weight.shape[0]
    c_pad = _SUB * pl.cdiv(n_out, _SUB)

    # Batch tile: multiple of 128 lanes, capped by max_tile_lanes and by the
    # (padded) batch itself.
    b_lanes = _LANES * pl.cdiv(B, _LANES)
    tb = max(_LANES, _LANES * (max_tile_lanes // _LANES))
    tb = min(tb, b_lanes)
    num_steps = pl.cdiv(b_lanes, tb)
    b_pad = num_steps * tb

    f32 = jnp.float32
    x_f = x.astype(f32)
    if b_pad != B:                       # trace-time check; no pad op if aligned
        x_f = jnp.pad(x_f, ((0, b_pad - B), (0, 0)))
    w_pad = jnp.zeros((c_pad, n_in), f32).at[:n_out, :].set(weight.astype(f32))
    bias_pad = jnp.full((c_pad, 1), _NEG_BIG, f32).at[:n_out, 0].set(bias.astype(f32))

    cost = pl.CostEstimate(
        flops=b_pad * c_pad * (2 * n_in + 8),
        transcendentals=c_pad * b_pad,
        bytes_accessed=4 * (b_pad * n_in + c_pad * b_pad + c_pad * n_in + c_pad),
    )

    out_T = pl.pallas_call(
        _linear_softmax_kernel,
        out_shape=jax.ShapeDtypeStruct((c_pad, b_pad), f32),
        grid_spec=pl.GridSpec(
            grid=(num_steps,),
            in_specs=[
                # x tile in natural layout; last dim == full array dim, so the
                # (8,128) divisibility rule is waived.
                pl.BlockSpec((tb, n_in), lambda i: (i, 0)),
                pl.BlockSpec((c_pad, n_in), lambda i: (0, 0)),   # weight, resident
                pl.BlockSpec((c_pad, 1), lambda i: (0, 0)),      # bias, resident
            ],
            out_specs=pl.BlockSpec((c_pad, tb), lambda i: (0, i)),
        ),
        compiler_params=pltpu.CompilerParams(
            dimension_semantics=("parallel",),       # shard batch tiles over TCs
            vmem_limit_bytes=vmem_limit_bytes,
        ),
        cost_estimate=cost,
    )(x_f, w_pad, bias_pad)

    if transpose_output:
        # Single fused slice+transpose back to the PyTorch-facing (B, n_out).
        return out_T[:n_out, :B].T
    # Classes-major (n_out, B): no transpose pass; useful when the surrounding
    # pipeline keeps activations in (features, B) layout end-to-end.
    return out_T[:n_out, :B]


@jax.jit
def _linear_classifier_xla(x, weight, bias):
    x = x.astype(jnp.float32)
    return jax.nn.softmax(x @ weight.astype(jnp.float32).T
                          + bias.astype(jnp.float32)[None, :], axis=1)


def linear_classifier_forward(x, weight, bias, *, min_pallas_batch=1024,
                              max_tile_lanes=8192, vmem_limit_bytes=None):
    """Forward of LinearClassifier: softmax(x @ W.T + b, dim=1).

    x: (B, n) f32, weight: (6, n) (PyTorch layout), bias: (6,). Returns (B, 6).
    """
    B = x.shape[0]
    if B < min_pallas_batch:
        # Small-batch fallback (per review): pallas_call fixed cost dominates.
        return _linear_classifier_xla(x, weight, bias)
    return _linear_classifier_pallas(x, weight, bias,
                                     max_tile_lanes=max_tile_lanes,
                                     vmem_limit_bytes=vmem_limit_bytes)


if __name__ == "__main__":
    n = 5        # LinearClassifier(n=5)
    n_out = 6
    batch = 8

    key = jax.random.PRNGKey(0)
    kx, kw, kb, kx2 = jax.random.split(key, 4)

    # Deterministic params, matching nn.Linear's U(-1/sqrt(n), 1/sqrt(n)) init.
    bound = 1.0 / jnp.sqrt(jnp.float32(n))
    weight = jax.random.uniform(kw, (n_out, n), jnp.float32, -bound, bound)
    bias = jax.random.uniform(kb, (n_out,), jnp.float32, -bound, bound)
    x = jax.random.normal(kx, (batch, n), jnp.float32)

    # --- exercise the Pallas kernel directly at the demo size ---
    y = jax.block_until_ready(_linear_classifier_pallas(x, weight, bias))
    ref = jax.nn.softmax(x @ weight.T + bias[None, :], axis=1)
    assert y.shape == (batch, n_out)
    assert jnp.allclose(y, ref, atol=1e-5, rtol=1e-5), "kernel mismatch vs reference"
    assert jnp.allclose(jnp.sum(y, axis=1), 1.0, atol=1e-5), "softmax rows must sum to 1"

    # --- multi-step grid + ragged batch padding (small shapes, tiny tile) ---
    x2 = jax.random.normal(kx2, (300, n), jnp.float32)
    y2 = jax.block_until_ready(
        _linear_classifier_pallas(x2, weight, bias, max_tile_lanes=128))
    ref2 = jax.nn.softmax(x2 @ weight.T + bias[None, :], axis=1)
    assert y2.shape == (300, n_out)
    assert jnp.allclose(y2, ref2, atol=1e-5, rtol=1e-5)
    assert jnp.allclose(jnp.sum(y2, axis=1), 1.0, atol=1e-5)

    # --- public wrapper (takes the XLA small-batch fallback at B=8) ---
    y_api = jax.block_until_ready(linear_classifier_forward(x, weight, bias))
    assert jnp.allclose(y_api, ref, atol=1e-5, rtol=1e-5)

    print("KERNEL_OK")
</pallas_src>

<mosaic_0001>
module attributes {stable_mosaic.version = 11 : i64} {
  func.func @_linear_softmax_kernel(%arg0: i32, %arg1: memref<128x5xf32, #tpu.memory_space<vmem>>, %arg2: memref<8x5xf32, #tpu.memory_space<vmem>>, %arg3: memref<8x1xf32, #tpu.memory_space<vmem>>, %arg4: memref<8x128xf32, #tpu.memory_space<vmem>>) attributes {dimension_semantics = [#tpu.dimension_semantics<parallel>], iteration_bounds = array<i64: 1>, scalar_prefetch = 0 : i64, scratch_operands = 0 : i64, tpu.core_type = #tpu.core_type<tc>, window_params = [{transform_indices = @transform_0, window_bounds = array<i64: 128, 5>}, {pipeline_mode = #tpu.pipeline_mode<synchronous>, transform_indices = @transform_1, window_bounds = array<i64: 8, 5>}, {pipeline_mode = #tpu.pipeline_mode<synchronous>, transform_indices = @transform_2, window_bounds = array<i64: 8, 1>}, {transform_indices = @transform_3, window_bounds = array<i64: 8, 128>}]} {
    %c0 = arith.constant 0 : index
    %c0_0 = arith.constant 0 : index
    %0 = vector.load %arg1[%c0, %c0_0] : memref<128x5xf32, #tpu.memory_space<vmem>>, vector<128x5xf32>
    %1 = tpu.transpose %0, [1, 0] : vector<128x5xf32> -> vector<5x128xf32>
    %c0_1 = arith.constant 0 : index
    %c0_2 = arith.constant 0 : index
    %2 = vector.load %arg2[%c0_1, %c0_2] : memref<8x5xf32, #tpu.memory_space<vmem>>, vector<8x5xf32>
    %3 = vector.extract_strided_slice %2 {offsets = [0, 0], sizes = [8, 1], strides = [1, 1]} : vector<8x5xf32> to vector<8x1xf32>
    %4 = vector.extract_strided_slice %1 {offsets = [0, 0], sizes = [1, 128], strides = [1, 1]} : vector<5x128xf32> to vector<1x128xf32>
    %5 = vector.broadcast %3 : vector<8x1xf32> to vector<8x128xf32>
    %6 = vector.broadcast %4 : vector<1x128xf32> to vector<8x128xf32>
    %7 = arith.mulf %5, %6 : vector<8x128xf32>
    %8 = vector.extract_strided_slice %2 {offsets = [0, 1], sizes = [8, 1], strides = [1, 1]} : vector<8x5xf32> to vector<8x1xf32>
    %9 = vector.extract_strided_slice %1 {offsets = [1, 0], sizes = [1, 128], strides = [1, 1]} : vector<5x128xf32> to vector<1x128xf32>
    %10 = vector.broadcast %8 : vector<8x1xf32> to vector<8x128xf32>
    %11 = vector.broadcast %9 : vector<1x128xf32> to vector<8x128xf32>
    %12 = arith.mulf %10, %11 : vector<8x128xf32>
    %13 = arith.addf %7, %12 : vector<8x128xf32>
    %14 = vector.extract_strided_slice %2 {offsets = [0, 2], sizes = [8, 1], strides = [1, 1]} : vector<8x5xf32> to vector<8x1xf32>
    %15 = vector.extract_strided_slice %1 {offsets = [2, 0], sizes = [1, 128], strides = [1, 1]} : vector<5x128xf32> to vector<1x128xf32>
    %16 = vector.broadcast %14 : vector<8x1xf32> to vector<8x128xf32>
    %17 = vector.broadcast %15 : vector<1x128xf32> to vector<8x128xf32>
    %18 = arith.mulf %16, %17 : vector<8x128xf32>
    %19 = arith.addf %13, %18 : vector<8x128xf32>
    %20 = vector.extract_strided_slice %2 {offsets = [0, 3], sizes = [8, 1], strides = [1, 1]} : vector<8x5xf32> to vector<8x1xf32>
    %21 = vector.extract_strided_slice %1 {offsets = [3, 0], sizes = [1, 128], strides = [1, 1]} : vector<5x128xf32> to vector<1x128xf32>
    %22 = vector.broadcast %20 : vector<8x1xf32> to vector<8x128xf32>
    %23 = vector.broadcast %21 : vector<1x128xf32> to vector<8x128xf32>
    %24 = arith.mulf %22, %23 : vector<8x128xf32>
    %25 = arith.addf %19, %24 : vector<8x128xf32>
    %26 = vector.extract_strided_slice %2 {offsets = [0, 4], sizes = [8, 1], strides = [1, 1]} : vector<8x5xf32> to vector<8x1xf32>
    %27 = vector.extract_strided_slice %1 {offsets = [4, 0], sizes = [1, 128], strides = [1, 1]} : vector<5x128xf32> to vector<1x128xf32>
    %28 = vector.broadcast %26 : vector<8x1xf32> to vector<8x128xf32>
    %29 = vector.broadcast %27 : vector<1x128xf32> to vector<8x128xf32>
    %30 = arith.mulf %28, %29 : vector<8x128xf32>
    %31 = arith.addf %25, %30 : vector<8x128xf32>
    %c0_3 = arith.constant 0 : index
    %c0_4 = arith.constant 0 : index
    %32 = vector.load %arg3[%c0_3, %c0_4] : memref<8x1xf32, #tpu.memory_space<vmem>>, vector<8x1xf32>
    %33 = vector.broadcast %32 : vector<8x1xf32> to vector<8x128xf32>
    %34 = arith.addf %31, %33 : vector<8x128xf32>
    %cst = arith.constant dense<0xFF800000> : vector<128xf32>
    %35 = vector.multi_reduction <maximumf>, %34, %cst [0] : vector<8x128xf32> to vector<128xf32>
    %36 = vector.shape_cast %35 : vector<128xf32> to vector<1x128xf32>
    %37 = vector.broadcast %36 : vector<1x128xf32> to vector<8x128xf32>
    %38 = arith.subf %34, %37 : vector<8x128xf32>
    %39 = math.exp %38 : vector<8x128xf32>
    %cst_5 = arith.constant dense<0.000000e+00> : vector<128xf32>
    %40 = vector.multi_reduction <add>, %39, %cst_5 [0] : vector<8x128xf32> to vector<128xf32>
    %41 = vector.shape_cast %40 : vector<128xf32> to vector<1x128xf32>
    %42 = vector.broadcast %41 : vector<1x128xf32> to vector<8x128xf32>
    %43 = arith.divf %39, %42 : vector<8x128xf32>
    %c0_6 = arith.constant 0 : index
    %c0_7 = arith.constant 0 : index
    %44 = vector.load %arg4[%c0_6, %c0_7] : memref<8x128xf32, #tpu.memory_space<vmem>>, vector<8x128xf32>
    tpu.vector_store %arg4[%c0_6, %c0_7], %43 {strides = array<i32>} : memref<8x128xf32, #tpu.memory_space<vmem>>, vector<8x128xf32>,
    return
  }
  func.func @transform_0(%arg0: i32) -> (i32, i32) {
    %c0_i32 = arith.constant 0 : i32
    %c0_i32_0 = arith.constant 0 : i32
    return %arg0, %c0_i32 : i32, i32
  }
  func.func @transform_1(%arg0: i32) -> (i32, i32) {
    %c0_i32 = arith.constant 0 : i32
    %c0_i32_0 = arith.constant 0 : i32
    %c0_i32_1 = arith.constant 0 : i32
    return %c0_i32, %c0_i32_0 : i32, i32
  }
  func.func @transform_2(%arg0: i32) -> (i32, i32) {
    %c0_i32 = arith.constant 0 : i32
    %c0_i32_0 = arith.constant 0 : i32
    %c0_i32_1 = arith.constant 0 : i32
    return %c0_i32, %c0_i32_0 : i32, i32
  }
  func.func @transform_3(%arg0: i32) -> (i32, i32) {
    %c0_i32 = arith.constant 0 : i32
    %c0_i32_0 = arith.constant 0 : i32
    return %c0_i32, %arg0 : i32, i32
  }
}

</mosaic_0001>

<bundles_post_ra>
// kernel: _linear_classifier_pallas.1
= control target key start
LH: loop header
LB: loop body
LE: loop exit
PB: predicated region body
PF: predicated region fallthrough
CT: control target
= control target key end

     0   :  { %v157_v0 = vmov 2   ;;  %v158_v2 = vmov 0   ;;  %v159_v3 = vmov 3   ;;  %v160_v4 = vmov 1   ;;  %s239_s1 = inlined_call_operand.vmem [shape: f32[8,5], index: 1, kind: input, shape index: {}]   ;;  %s240_s2 = inlined_call_operand.vmem [shape: f32[8,1], index: 2, kind: input, shape index: {}]   ;;  %s241_s0 = inlined_call_operand.vmem [shape: f32[128,5], index: 0, kind: input, shape index: {}]   ;;  %s242_s3 = inlined_call_operand.vmem [shape: f32[8,128], index: 3, kind: output, shape index: {}]  }
   0x1   :  { %149 = vset.pattern.permute.xlu1 %v157_v0  ;;  %v62_v1 = vld [vmem:[%s239_s1] sm:$0xff]  ;;  %147 = vset.pattern.permute.xlu0 %v158_v2  ;;  %v161_v6 = vmov 4   ;;  %v15_v8 = vld [vmem:[%s241_s0 + $0x8] sm:$0xff]  ;;  %v16_v9 = vld [vmem:[%s241_s0 + $0x10] sm:$0xff]  ;;  %v68_v24 = vlaneseq }
   0x2   :  { %84 = vperm.xlu1 %149, %v62_v1   ;;  %65 = vperm.xlu0 %147, %v62_v1   ;;  %v113_v5 = vld [vmem:[%s240_s2] sm:$0xff]  ;;  %v17_v10 = vld [vmem:[%s241_s0 + $0x18] sm:$0xff]  ;;  %v19_v12 = vld [vmem:[%s241_s0 + $0x28] sm:$0xff] }
   0x3   :  { %v14_v7 = vld [vmem:[%s241_s0] sm:$0xff]  ;;  %v20_v13 = vld [vmem:[%s241_s0 + $0x30] sm:$0xff]  ;;  %v21_v14 = vld [vmem:[%s241_s0 + $0x38] sm:$0xff]  ;;  %v69_v26 = vshrl.u32 %v68_v24, 7 }
   0x4   :  { %v18_v11 = vld [vmem:[%s241_s0 + $0x20] sm:$0xff]  ;;  %v23_v16 = vld [vmem:[%s241_s0 + $0x48] sm:$0xff]  ;;  %v24_v17 = vld [vmem:[%s241_s0 + $0x50] sm:$0xff] }
   0x5   :  { %v22_v15 = vld [vmem:[%s241_s0 + $0x40] sm:$0xff]  ;;  %v25_v18 = vld [vmem:[%s241_s0 + $0x58] sm:$0xff]  ;;  %v27_v20 = vld [vmem:[%s241_s0 + $0x68] sm:$0xff]  ;;  %v70_v29 = vsub.s32 0, %v69_v26  ;;  %v89_v30 = vsub.s32 2, %v69_v26  ;;  %v79_v31 = vsub.s32 1, %v69_v26 }
   0x6   :  { %150 = vset.pattern.permute.xlu1 %v159_v3  ;;  %148 = vset.pattern.permute.xlu0 %v160_v4  ;;  %v26_v19 = vld [vmem:[%s241_s0 + $0x60] sm:$0xff]  ;;  %v28_v21 = vld [vmem:[%s241_s0 + $0x70] sm:$0xff]  ;;  %v29_v22 = vld [vmem:[%s241_s0 + $0x78] sm:$0xff]  ;;  %v99_v32 = vsub.s32 3, %v69_v26  ;;  %v109_v36 = vsub.s32 4, %v69_v26 }
   0x7   :  { %94 = vperm.xlu1 %150, %v62_v1   ;;  %74 = vperm.xlu0 %148, %v62_v1  }
   0xb   :  { %151 = vset.pattern.permute.xlu1 %v161_v6  ;;  %152 = vset.pattern.permute.xlu0 %v158_v2 }
   0xc   :  { %104 = vperm.xlu1 %151, %v62_v1   ;;  %116 = vperm.xlu0 %152, %v113_v5  }
  0x35   :  { %30 = vxpose.xlu1.b32.start [1/16] (narrow) %v14_v7, 8 }
  0x39   :  { %31 = vxpose.xlu1.b32.cont [2/16] (narrow) %v15_v8, 8 }
  0x3d   :  { %32 = vxpose.xlu1.b32.cont [3/16] (narrow) %v16_v9, 8 }
  0x41   :  { %33 = vxpose.xlu1.b32.cont [4/16] (narrow) %v17_v10, 8 }
  0x45   :  { %34 = vxpose.xlu1.b32.cont [5/16] (narrow) %v18_v11, 8 }
  0x49   :  { %35 = vxpose.xlu1.b32.cont [6/16] (narrow) %v19_v12, 8 }
  0x4d   :  { %36 = vxpose.xlu1.b32.cont [7/16] (narrow) %v20_v13, 8 }
  0x51   :  { %37 = vxpose.xlu1.b32.cont [8/16] (narrow) %v21_v14, 8 }
  0x55   :  { %38 = vxpose.xlu1.b32.cont [9/16] (narrow) %v22_v15, 8 }
  0x59   :  { %39 = vxpose.xlu1.b32.cont [10/16] (narrow) %v23_v16, 8 }
  0x5d   :  { %40 = vxpose.xlu1.b32.cont [11/16] (narrow) %v24_v17, 8 }
  0x61   :  { %41 = vxpose.xlu1.b32.cont [12/16] (narrow) %v25_v18, 8 }
  0x65   :  { %42 = vxpose.xlu1.b32.cont [13/16] (narrow) %v26_v19, 8 }
  0x69   :  { %43 = vxpose.xlu1.b32.cont [14/16] (narrow) %v27_v20, 8 }
  0x6d   :  { %44 = vxpose.xlu1.b32.cont [15/16] (narrow) %v28_v21, 8 }
  0x71   :  { %45 = vxpose.xlu1.b32.end [16/16] (narrow) %v29_v22, 8 }
  0x81   :  { %v85_v23 = vpop.permute.xlu1 %84  ;;  %v66_v27 = vpop.permute.xlu0 %65 }
  0x86   :  { %v95_v25 = vpop.permute.xlu1 %94  ;;  %v75_v35 = vpop.permute.xlu0 %74 }
  0x8b   :  { %v105_v28 = vpop.permute.xlu1 %104  ;;  %v117_v49 = vpop.permute.xlu0 %116 }
  0xb5   :  { %v46_v33 = vpop.trf.xlu1 }
  0xb6   :  { %v71_v34 = vrot.slane %v46_v33, %v70_v29  ;;  %v90_v37 = vrot.slane %v46_v33, %v89_v30  ;;  %v80_v38 = vrot.slane %v46_v33, %v79_v31  ;;  %v100_v40 = vrot.slane %v46_v33, %v99_v32 }
  0xb7   :  { %v110_v42 = vrot.slane %v46_v33, %v109_v36 }
  0xb8   :  { %v72_v39 = vmul.f32 %v71_v34, %v66_v27  ;;  %v81_v41 = vmul.f32 %v80_v38, %v75_v35  ;;  %v91_v44 = vmul.f32 %v90_v37, %v85_v23  ;;  %v101_v46 = vmul.f32 %v100_v40, %v95_v25 }
  0xb9   :  { %v111_v48 = vmul.f32 %v110_v42, %v105_v28 }
  0xba   :  { %v82_v43 = vadd.f32 %v81_v41, %v72_v39 }
  0xbc   :  { %v92_v45 = vadd.f32 %v91_v44, %v82_v43 }
  0xbe   :  { %v102_v47 = vadd.f32 %v101_v46, %v92_v45 }
  0xc0   :  { %v112_v50 = vadd.f32 %v111_v48, %v102_v47 }
  0xc2   :  { %v119_v51 = vadd.f32 %v117_v49, %v112_v50 }
  0xc4   :  { %v120_v52 = vrot.slane %v119_v51, 4 }
  0xc6   :  { %v121_v53 = vmax.f32 %v119_v51, %v120_v52 }
  0xc8   :  { %v122_v54 = vrot.slane %v121_v53, 2 }
  0xca   :  { %v123_v55 = vmax.f32 %v121_v53, %v122_v54 }
  0xcc   :  { %v124_v56 = vrot.slane %v123_v55, 1 }
  0xce   :  { %v125_v57 = vmax.f32 %v123_v55, %v124_v56 }
  0xd0   :  { %v126_v58 = vsub.f32 %v119_v51, %v125_v57 }
  0xd2   :  { %v127_v59 = vmul.f32 1.442695, %v126_v58 }
  0xd4   :  { %153 = vpow2.f32 %v127_v59 }
  0xde   :  { %v154_v60 = vpop.eup %153 }
  0xdf   :  { %v129_v61 = vrot.slane %v154_v60, 4 }
  0xe1   :  { %v130_v62 = vadd.f32 %v154_v60, %v129_v61 }
  0xe3   :  { %v131_v63 = vrot.slane %v130_v62, 2 }
  0xe5   :  { %v132_v0 = vadd.f32 %v131_v63, %v130_v62 }
  0xe7   :  { %v133_v1 = vrot.slane %v132_v0, 1 }
  0xe9   :  { %v134_v2 = vadd.f32 %v133_v1, %v132_v0 }
  0xeb   :  { %155 = vrcp.f32 %v134_v2 }
  0xf5   :  { %v156_v3 = vpop.eup %155 }
  0xf6   :  { %v136_v4 = vmul.f32 %v156_v3, %v154_v60 }
  0xf8   :  { %137 = vst [vmem:[%s242_s3] sm:$0xff] %v136_v4 }

</bundles_post_ra>
